<compile_context>
chip_gen: v6e
topology: v6e:2x2x1
jax: 0.10.0
libtpu: 0.0.40
codegen_flags: <defaults>
</compile_context>

<pallas_src>
import functools
import math

import numpy as np
import jax
import jax.numpy as jnp
from jax.experimental import pallas as pl
from jax.experimental.pallas import tpu as pltpu


def _persample_sum(y):
    """(G, L, C) -> (G, 1, 1) via lane reduce then sublane reduce."""
    return jnp.sum(jnp.sum(y, axis=2, keepdims=True), axis=1, keepdims=True)


def _deconv_gn_gelu_kernel(x_ref, w_ref, b_ref, g_ref, bt_ref, o_ref,
                           *, apply_norm_act: bool, eps: float):
    G, L, cin = x_ref.shape
    cout = w_ref.shape[1] // 3
    GL = G * L

    # bf16 operands -> native MXU rate, f32 accumulation.
    x = x_ref[...].reshape(GL, cin).astype(w_ref.dtype)                 # (GL, Cin) bf16
    z = jnp.dot(x, w_ref[...], preferred_element_type=jnp.float32)      # (GL, 3*Cout) f32

    z_e = z[:, :cout]                 # tap k=1 -> y[2j]
    z_o = z[:, cout:2 * cout]         # tap k=2 -> y[2j+1] contribution from x[j]
    z0 = z[:, 2 * cout:]              # tap k=0 -> y[2j+1] needs z0[j+1]

    # Shift the tap-0 *product* up one time step via the (otherwise idle) XLU:
    # roll(GL-1) == roll(-1): row r picks up row r+1 (mod GL).  The per-sample last
    # row (j == L-1) must be zero (x[L] := 0); masking it also zeroes the
    # cross-sample wraparound rows, so one mask handles both.
    z0s = pltpu.roll(z0, shift=GL - 1, axis=0).reshape(G, L, cout)
    row = jax.lax.broadcasted_iota(jnp.int32, (L, cout), 0)
    z0s = jnp.where(row < L - 1, z0s, 0.0)

    bias = b_ref[...]                                                   # (1, Cout) f32
    y_e = z_e.reshape(G, L, cout) + bias                                # even time steps
    y_o = z_o.reshape(G, L, cout) + z0s + bias                          # odd time steps

    if apply_norm_act:
        # GroupNorm(1, C): per-sample stats over all 2*L*Cout outputs, single pass,
        # computed as the sum of the two per-half partial reductions and folded into
        # a per-channel scale/offset.
        n = 2.0 * L * cout
        s1 = _persample_sum(y_e) + _persample_sum(y_o)                  # (G, 1, 1)
        s2 = _persample_sum(y_e * y_e) + _persample_sum(y_o * y_o)      # (G, 1, 1)
        mean = s1 * (1.0 / n)
        var = jnp.maximum(s2 * (1.0 / n) - mean * mean, 0.0)
        inv = jax.lax.rsqrt(var + eps)
        scale = inv * g_ref[...]                                        # (G, 1, Cout)
        off = bt_ref[...] - mean * scale                                # (G, 1, Cout)
        # tanh-approx GELU -> EUP slot (exact erf burns VALU ops).
        y_e = jax.nn.gelu(y_e * scale + off, approximate=True)
        y_o = jax.nn.gelu(y_o * scale + off, approximate=True)

    # Direct half-writes (no (L, 2C) concat slab). Lane-major [even | odd]; the
    # wrapper's contiguous (B, L, 2C) -> (B, 2L, C) reshape interleaves time order.
    o_ref[:, :, :cout] = y_e.astype(o_ref.dtype)
    o_ref[:, :, cout:] = y_o.astype(o_ref.dtype)


def _vmem_capacity_bytes() -> int:
    """Physical VMEM of the local TPU generation (v5e/v6e: 128 MiB, v7x: 64 MiB)."""
    try:
        cap = getattr(pltpu.get_tpu_info(), "vmem_capacity_bytes", None)
        if cap:
            return int(cap)
    except Exception:
        pass
    return 64 << 20   # conservative default (v7x per-core figure)


def _samples_per_step(batch: int, seq_len: int, target_rows: int = 256) -> int:
    """Batch G samples per grid step so the matmul M dim (~G*L) fills the MXU when L
    is short (early decoder layers); G must divide the batch."""
    g = max(1, min(batch, target_rows // max(seq_len, 1)))
    while batch % g:
        g -= 1
    return g


def deconv_block(x_blc, w_all, bias, gamma, beta, *,
                 apply_norm_act=True, eps=1e-5, out_dtype=jnp.float32):
    """One block: ConvTranspose1d(k=3,s=2,p=1,op=1) [+ GroupNorm(1,C) + GELU].

    x_blc : (B, L, Cin)    channels-last (bf16 preferred)
    w_all : (Cin, 3*Cout)  bf16, kernel taps concatenated on lanes as [k=1 | k=2 | k=0]
    bias/gamma/beta : (1, Cout) f32
    returns (B, 2L, Cout) in out_dtype
    """
    B, L, cin = x_blc.shape
    cout = w_all.shape[1] // 3
    c2 = 2 * cout

    G = _samples_per_step(B, L)
    grid = (B // G,)

    kernel = functools.partial(_deconv_gn_gelu_kernel,
                               apply_norm_act=apply_norm_act, eps=eps)

    # VMEM budget: double-buffered x/out blocks, (conservatively doubled) constants,
    # plus all live f32 temporaries (z: 3C/row, z0s: C/row, y_e+y_o: 2C/row -> 8C/row headroom).
    in_bytes = G * L * cin * np.dtype(x_blc.dtype).itemsize
    out_bytes = G * L * c2 * np.dtype(out_dtype).itemsize
    const_bytes = w_all.size * np.dtype(w_all.dtype).itemsize + 3 * cout * 4
    tmp_bytes = G * L * cout * 4 * 8
    need = 2 * (in_bytes + out_bytes) + 2 * const_bytes + tmp_bytes + (4 << 20)
    cap = _vmem_capacity_bytes() - (8 << 20)          # stay below physical VMEM (v7x: 64 MiB)
    vmem_limit = int(min(max(need, 32 << 20), cap))

    out = pl.pallas_call(
        kernel,
        out_shape=jax.ShapeDtypeStruct((B, L, c2), out_dtype),
        grid_spec=pltpu.PrefetchScalarGridSpec(
            num_scalar_prefetch=0,
            grid=grid,
            in_specs=[
                pl.BlockSpec((G, L, cin), lambda b: (b, 0, 0)),
                # constant index maps: fetched once, reused across the batch grid
                pl.BlockSpec((cin, 3 * cout), lambda b: (0, 0)),
                pl.BlockSpec((1, cout), lambda b: (0, 0)),
                pl.BlockSpec((1, cout), lambda b: (0, 0)),
                pl.BlockSpec((1, cout), lambda b: (0, 0)),
            ],
            out_specs=pl.BlockSpec((G, L, c2), lambda b: (b, 0, 0)),
        ),
        compiler_params=pltpu.CompilerParams(
            dimension_semantics=("parallel",),        # batch axis: megacore / v7x 2-TC sharding
            vmem_limit_bytes=vmem_limit,
        ),
    )(x_blc, w_all, bias, gamma, beta)

    # (B, L, 2C) -> (B, 2L, C): contiguous, copy-free reshape == even/odd time interleave.
    return out.reshape(B, 2 * L, cout)


def prepare_decoder_params(params, compute_dtype=jnp.bfloat16):
    """One-time weight prep, hoisted out of the per-call path.

    params: list of (weight (Cin, Cout, 3), bias (Cout,), gamma (Cout,), beta (Cout,)).
    Returns per layer: (w_all (Cin, 3*Cout) bf16 with taps [k=1 | k=2 | k=0],
                        bias/gamma/beta as (1, Cout) f32).
    """
    prepped = []
    for (w, b, g, bt) in params:
        w_all = jnp.concatenate([w[:, :, 1], w[:, :, 2], w[:, :, 0]], axis=1)
        prepped.append((w_all.astype(compute_dtype),
                        b.reshape(1, -1).astype(jnp.float32),
                        g.reshape(1, -1).astype(jnp.float32),
                        bt.reshape(1, -1).astype(jnp.float32)))
    return prepped


def conv_decoder_tueg_forward(x_ncl, prepped_params, *,
                              interlayer_dtype=jnp.bfloat16, eps=1e-5,
                              plain_last_block=False):
    """x_ncl: (B, C, L). plain_last_block mirrors is_last_layer (final block = conv only)."""
    x = jnp.transpose(x_ncl, (0, 2, 1)).astype(interlayer_dtype)   # NCL -> (B, L, C) bf16
    n_layers = len(prepped_params)
    for i, (w_all, b, g, bt) in enumerate(prepped_params):
        is_last = i == n_layers - 1
        out_dtype = jnp.float32 if is_last else interlayer_dtype
        x = deconv_block(x, w_all, b, g, bt,
                         apply_norm_act=not (plain_last_block and is_last),
                         eps=eps, out_dtype=out_dtype)
    return jnp.transpose(x, (0, 2, 1))                              # back to NCL


# ----------------------------- numpy reference ------------------------------
def _ref_conv_transpose1d(x, w, b, stride=2, padding=1, output_padding=1):
    Bn, cin, L = x.shape
    cout, K = w.shape[1], w.shape[2]
    Lout = (L - 1) * stride - 2 * padding + K + output_padding
    y = np.zeros((Bn, cout, Lout), np.float64)
    for n in range(Bn):
        for s in range(L):
            for k in range(K):
                t = s * stride - padding + k
                if 0 <= t < Lout:
                    y[n, :, t] += x[n, :, s] @ w[:, :, k]
    return y + b[None, :, None]


def _ref_groupnorm1(y, gamma, beta, eps=1e-5):
    mean = y.mean(axis=(1, 2), keepdims=True)
    var = y.var(axis=(1, 2), keepdims=True)
    return (y - mean) / np.sqrt(var + eps) * gamma[None, :, None] + beta[None, :, None]


def _ref_gelu(x):
    erf = np.vectorize(math.erf)
    return 0.5 * x * (1.0 + erf(x / math.sqrt(2.0)))


# ---------------------------------- main -------------------------------------
if __name__ == "__main__":
    B, L0, C, K = 2, 8, 32, 3     # small: batch=2, embedding=32, seq=8
    n_layers = 2

    key = jax.random.PRNGKey(0)
    params = []
    for _ in range(n_layers):
        key, k1, k2, k3, k4 = jax.random.split(key, 5)
        w = jax.random.normal(k1, (C, C, K), jnp.float32) / np.sqrt(C * K)
        b = 0.1 * jax.random.normal(k2, (C,), jnp.float32)
        gamma = 1.0 + 0.1 * jax.random.normal(k3, (C,), jnp.float32)
        beta = 0.1 * jax.random.normal(k4, (C,), jnp.float32)
        params.append((w, b, gamma, beta))
    key, kx = jax.random.split(key)
    x_ncl = jax.random.normal(kx, (B, C, L0), jnp.float32)

    prepped = prepare_decoder_params(params)                  # hoisted, one-time weight prep
    out = jax.jit(conv_decoder_tueg_forward)(x_ncl, prepped)  # (B, C, L0 * 2**n_layers)
    out = jax.block_until_ready(out)

    # independent reference (pure numpy, direct transposed-conv formula, float64, exact-erf GELU).
    # Tolerance reflects the deliberate bf16 MXU operands / bf16 inter-layer activations and the
    # tanh-approximate GELU (deviation ~1e-3/layer) versus the exact f64 reference.
    y = np.asarray(x_ncl, np.float64)
    for (w, b, g, bt) in params:
        y = _ref_conv_transpose1d(y, np.asarray(w, np.float64), np.asarray(b, np.float64))
        y = _ref_groupnorm1(y, np.asarray(g, np.float64), np.asarray(bt, np.float64))
        y = _ref_gelu(y)

    assert out.shape == (B, C, L0 * (2 ** n_layers)), out.shape
    np.testing.assert_allclose(np.asarray(out, np.float64), y, rtol=3e-2, atol=3e-2)
    print("KERNEL_OK")
</pallas_src>

<mosaic_0001>
module attributes {stable_mosaic.version = 11 : i64} {
  func.func @_deconv_gn_gelu_kernel(%arg0: i32, %arg1: memref<2x16x32xbf16, #tpu.memory_space<vmem>>, %arg2: memref<32x96xbf16, #tpu.memory_space<vmem>>, %arg3: memref<1x32xf32, #tpu.memory_space<vmem>>, %arg4: memref<1x32xf32, #tpu.memory_space<vmem>>, %arg5: memref<1x32xf32, #tpu.memory_space<vmem>>, %arg6: memref<2x16x64xf32, #tpu.memory_space<vmem>>) attributes {dimension_semantics = [#tpu.dimension_semantics<parallel>], iteration_bounds = array<i64: 1>, scalar_prefetch = 0 : i64, scratch_operands = 0 : i64, tpu.core_type = #tpu.core_type<tc>, window_params = [{transform_indices = @transform_0, window_bounds = array<i64: 2, 16, 32>}, {pipeline_mode = #tpu.pipeline_mode<synchronous>, transform_indices = @transform_1, window_bounds = array<i64: 32, 96>}, {pipeline_mode = #tpu.pipeline_mode<synchronous>, transform_indices = @transform_2, window_bounds = array<i64: 1, 32>}, {pipeline_mode = #tpu.pipeline_mode<synchronous>, transform_indices = @transform_3, window_bounds = array<i64: 1, 32>}, {pipeline_mode = #tpu.pipeline_mode<synchronous>, transform_indices = @transform_4, window_bounds = array<i64: 1, 32>}, {transform_indices = @transform_5, window_bounds = array<i64: 2, 16, 64>}]} {
    %c0 = arith.constant 0 : index
    %c0_0 = arith.constant 0 : index
    %c0_1 = arith.constant 0 : index
    %0 = vector.load %arg1[%c0, %c0_0, %c0_1] : memref<2x16x32xbf16, #tpu.memory_space<vmem>>, vector<2x16x32xbf16>
    %1 = vector.shape_cast %0 : vector<2x16x32xbf16> to vector<32x32xbf16>
    %c0_2 = arith.constant 0 : index
    %c0_3 = arith.constant 0 : index
    %2 = vector.load %arg2[%c0_2, %c0_3] : memref<32x96xbf16, #tpu.memory_space<vmem>>, vector<32x96xbf16>
    %cst = arith.constant dense<0.000000e+00> : vector<32x96xf32>
    %3 = tpu.matmul %1, %2, %cst {dimension_numbers = #tpu.dot_dimension_numbers<[1], [0], [0], [1], [0, 0, 1, 1], [], []>} : vector<32x32xbf16>, vector<32x96xbf16>, vector<32x96xf32> -> vector<32x96xf32>
    %4 = vector.extract_strided_slice %3 {offsets = [0, 0], sizes = [32, 32], strides = [1, 1]} : vector<32x96xf32> to vector<32x32xf32>
    %5 = vector.extract_strided_slice %3 {offsets = [0, 32], sizes = [32, 32], strides = [1, 1]} : vector<32x96xf32> to vector<32x32xf32>
    %6 = vector.extract_strided_slice %3 {offsets = [0, 64], sizes = [32, 32], strides = [1, 1]} : vector<32x96xf32> to vector<32x32xf32>
    %c31_i32 = arith.constant 31 : i32
    %7 = tpu.dynamic_rotate %6 by %c31_i32 dim 0 : vector<32x32xf32>, i32 -> vector<32x32xf32>
    %8 = vector.shape_cast %7 : vector<32x32xf32> to vector<2x16x32xf32>
    %9 = tpu.iota {dimensions = array<i32: 0>} : vector<16x32xi32>
    %c15_i32 = arith.constant 15 : i32
    %10 = vector.broadcast %c15_i32 : i32 to vector<16x32xi32>
    %11 = arith.cmpi slt, %9, %10 : vector<16x32xi32>
    %cst_4 = arith.constant 0.000000e+00 : f32
    %12 = vector.shape_cast %11 : vector<16x32xi1> to vector<1x16x32xi1>
    %13 = vector.broadcast %12 : vector<1x16x32xi1> to vector<2x16x32xi1>
    %14 = vector.broadcast %cst_4 : f32 to vector<2x16x32xf32>
    %15 = arith.select %13, %8, %14 : vector<2x16x32xi1>, vector<2x16x32xf32>
    %c0_5 = arith.constant 0 : index
    %c0_6 = arith.constant 0 : index
    %16 = vector.load %arg3[%c0_5, %c0_6] : memref<1x32xf32, #tpu.memory_space<vmem>>, vector<1x32xf32>
    %17 = vector.shape_cast %4 : vector<32x32xf32> to vector<2x16x32xf32>
    %18 = vector.shape_cast %16 : vector<1x32xf32> to vector<1x1x32xf32>
    %19 = vector.broadcast %18 : vector<1x1x32xf32> to vector<2x16x32xf32>
    %20 = arith.addf %17, %19 : vector<2x16x32xf32>
    %21 = vector.shape_cast %5 : vector<32x32xf32> to vector<2x16x32xf32>
    %22 = arith.addf %21, %15 : vector<2x16x32xf32>
    %23 = vector.shape_cast %16 : vector<1x32xf32> to vector<1x1x32xf32>
    %24 = vector.broadcast %23 : vector<1x1x32xf32> to vector<2x16x32xf32>
    %25 = arith.addf %22, %24 : vector<2x16x32xf32>
    %cst_7 = arith.constant dense<0.000000e+00> : vector<2x16xf32>
    %26 = vector.multi_reduction <add>, %20, %cst_7 [2] : vector<2x16x32xf32> to vector<2x16xf32>
    %27 = vector.shape_cast %26 : vector<2x16xf32> to vector<2x16x1xf32>
    %cst_8 = arith.constant dense<0.000000e+00> : vector<2x1xf32>
    %28 = vector.multi_reduction <add>, %27, %cst_8 [1] : vector<2x16x1xf32> to vector<2x1xf32>
    %29 = vector.shape_cast %28 : vector<2x1xf32> to vector<2x1x1xf32>
    %cst_9 = arith.constant dense<0.000000e+00> : vector<2x16xf32>
    %30 = vector.multi_reduction <add>, %25, %cst_9 [2] : vector<2x16x32xf32> to vector<2x16xf32>
    %31 = vector.shape_cast %30 : vector<2x16xf32> to vector<2x16x1xf32>
    %cst_10 = arith.constant dense<0.000000e+00> : vector<2x1xf32>
    %32 = vector.multi_reduction <add>, %31, %cst_10 [1] : vector<2x16x1xf32> to vector<2x1xf32>
    %33 = vector.shape_cast %32 : vector<2x1xf32> to vector<2x1x1xf32>
    %34 = arith.addf %29, %33 : vector<2x1x1xf32>
    %35 = arith.mulf %20, %20 : vector<2x16x32xf32>
    %cst_11 = arith.constant dense<0.000000e+00> : vector<2x16xf32>
    %36 = vector.multi_reduction <add>, %35, %cst_11 [2] : vector<2x16x32xf32> to vector<2x16xf32>
    %37 = vector.shape_cast %36 : vector<2x16xf32> to vector<2x16x1xf32>
    %cst_12 = arith.constant dense<0.000000e+00> : vector<2x1xf32>
    %38 = vector.multi_reduction <add>, %37, %cst_12 [1] : vector<2x16x1xf32> to vector<2x1xf32>
    %39 = vector.shape_cast %38 : vector<2x1xf32> to vector<2x1x1xf32>
    %40 = arith.mulf %25, %25 : vector<2x16x32xf32>
    %cst_13 = arith.constant dense<0.000000e+00> : vector<2x16xf32>
    %41 = vector.multi_reduction <add>, %40, %cst_13 [2] : vector<2x16x32xf32> to vector<2x16xf32>
    %42 = vector.shape_cast %41 : vector<2x16xf32> to vector<2x16x1xf32>
    %cst_14 = arith.constant dense<0.000000e+00> : vector<2x1xf32>
    %43 = vector.multi_reduction <add>, %42, %cst_14 [1] : vector<2x16x1xf32> to vector<2x1xf32>
    %44 = vector.shape_cast %43 : vector<2x1xf32> to vector<2x1x1xf32>
    %45 = arith.addf %39, %44 : vector<2x1x1xf32>
    %cst_15 = arith.constant 9.765625E-4 : f32
    %46 = vector.broadcast %cst_15 : f32 to vector<2x1x1xf32>
    %47 = arith.mulf %34, %46 : vector<2x1x1xf32>
    %cst_16 = arith.constant 9.765625E-4 : f32
    %48 = vector.broadcast %cst_16 : f32 to vector<2x1x1xf32>
    %49 = arith.mulf %45, %48 : vector<2x1x1xf32>
    %50 = arith.mulf %47, %47 : vector<2x1x1xf32>
    %51 = arith.subf %49, %50 : vector<2x1x1xf32>
    %cst_17 = arith.constant 0.000000e+00 : f32
    %52 = vector.broadcast %cst_17 : f32 to vector<2x1x1xf32>
    %53 = arith.maximumf %51, %52 : vector<2x1x1xf32>
    %cst_18 = arith.constant 9.99999974E-6 : f32
    %54 = vector.broadcast %cst_18 : f32 to vector<2x1x1xf32>
    %55 = arith.addf %53, %54 : vector<2x1x1xf32>
    %56 = math.rsqrt %55 : vector<2x1x1xf32>
    %c0_19 = arith.constant 0 : index
    %c0_20 = arith.constant 0 : index
    %57 = vector.load %arg4[%c0_19, %c0_20] : memref<1x32xf32, #tpu.memory_space<vmem>>, vector<1x32xf32>
    %58 = vector.shape_cast %57 : vector<1x32xf32> to vector<1x1x32xf32>
    %59 = vector.broadcast %56 : vector<2x1x1xf32> to vector<2x1x32xf32>
    %60 = vector.broadcast %58 : vector<1x1x32xf32> to vector<2x1x32xf32>
    %61 = arith.mulf %59, %60 : vector<2x1x32xf32>
    %c0_21 = arith.constant 0 : index
    %c0_22 = arith.constant 0 : index
    %62 = vector.load %arg5[%c0_21, %c0_22] : memref<1x32xf32, #tpu.memory_space<vmem>>, vector<1x32xf32>
    %63 = vector.broadcast %47 : vector<2x1x1xf32> to vector<2x1x32xf32>
    %64 = arith.mulf %63, %61 : vector<2x1x32xf32>
    %65 = vector.shape_cast %62 : vector<1x32xf32> to vector<1x1x32xf32>
    %66 = vector.broadcast %65 : vector<1x1x32xf32> to vector<2x1x32xf32>
    %67 = arith.subf %66, %64 : vector<2x1x32xf32>
    %68 = vector.broadcast %61 : vector<2x1x32xf32> to vector<2x16x32xf32>
    %69 = arith.mulf %20, %68 : vector<2x16x32xf32>
    %70 = vector.broadcast %67 : vector<2x1x32xf32> to vector<2x16x32xf32>
    %71 = arith.addf %69, %70 : vector<2x16x32xf32>
    %72 = arith.mulf %71, %71 : vector<2x16x32xf32>
    %73 = arith.mulf %71, %72 : vector<2x16x32xf32>
    %cst_23 = arith.constant 4.471500e-02 : f32
    %74 = vector.broadcast %cst_23 : f32 to vector<2x16x32xf32>
    %75 = arith.mulf %74, %73 : vector<2x16x32xf32>
    %76 = arith.addf %71, %75 : vector<2x16x32xf32>
    %cst_24 = arith.constant 0.797884583 : f32
    %77 = vector.broadcast %cst_24 : f32 to vector<2x16x32xf32>
    %78 = arith.mulf %77, %76 : vector<2x16x32xf32>
    %79 = math.tanh %78 : vector<2x16x32xf32>
    %cst_25 = arith.constant 1.000000e+00 : f32
    %80 = vector.broadcast %cst_25 : f32 to vector<2x16x32xf32>
    %81 = arith.addf %80, %79 : vector<2x16x32xf32>
    %cst_26 = arith.constant 5.000000e-01 : f32
    %82 = vector.broadcast %cst_26 : f32 to vector<2x16x32xf32>
    %83 = arith.mulf %82, %81 : vector<2x16x32xf32>
    %84 = arith.mulf %71, %83 : vector<2x16x32xf32>
    %85 = vector.broadcast %61 : vector<2x1x32xf32> to vector<2x16x32xf32>
    %86 = arith.mulf %25, %85 : vector<2x16x32xf32>
    %87 = vector.broadcast %67 : vector<2x1x32xf32> to vector<2x16x32xf32>
    %88 = arith.addf %86, %87 : vector<2x16x32xf32>
    %89 = arith.mulf %88, %88 : vector<2x16x32xf32>
    %90 = arith.mulf %88, %89 : vector<2x16x32xf32>
    %cst_27 = arith.constant 4.471500e-02 : f32
    %91 = vector.broadcast %cst_27 : f32 to vector<2x16x32xf32>
    %92 = arith.mulf %91, %90 : vector<2x16x32xf32>
    %93 = arith.addf %88, %92 : vector<2x16x32xf32>
    %cst_28 = arith.constant 0.797884583 : f32
    %94 = vector.broadcast %cst_28 : f32 to vector<2x16x32xf32>
    %95 = arith.mulf %94, %93 : vector<2x16x32xf32>
    %96 = math.tanh %95 : vector<2x16x32xf32>
    %cst_29 = arith.constant 1.000000e+00 : f32
    %97 = vector.broadcast %cst_29 : f32 to vector<2x16x32xf32>
    %98 = arith.addf %97, %96 : vector<2x16x32xf32>
    %cst_30 = arith.constant 5.000000e-01 : f32
    %99 = vector.broadcast %cst_30 : f32 to vector<2x16x32xf32>
    %100 = arith.mulf %99, %98 : vector<2x16x32xf32>
    %101 = arith.mulf %88, %100 : vector<2x16x32xf32>
    %c0_31 = arith.constant 0 : index
    %c0_32 = arith.constant 0 : index
    %c0_33 = arith.constant 0 : index
    %102 = vector.load %arg6[%c0_31, %c0_32, %c0_33] : memref<2x16x64xf32, #tpu.memory_space<vmem>>, vector<2x16x32xf32>
    tpu.vector_store %arg6[%c0_31, %c0_32, %c0_33], %84 {strides = array<i32>} : memref<2x16x64xf32, #tpu.memory_space<vmem>>, vector<2x16x32xf32>,
    %c0_34 = arith.constant 0 : index
    %c0_35 = arith.constant 0 : index
    %c32 = arith.constant 32 : index
    %103 = vector.load %arg6[%c0_34, %c0_35, %c32] : memref<2x16x64xf32, #tpu.memory_space<vmem>>, vector<2x16x32xf32>
    tpu.vector_store %arg6[%c0_34, %c0_35, %c32], %101 {strides = array<i32>} : memref<2x16x64xf32, #tpu.memory_space<vmem>>, vector<2x16x32xf32>,
    return
  }
  func.func @transform_0(%arg0: i32) -> (i32, i32, i32) {
    %c0_i32 = arith.constant 0 : i32
    %c0_i32_0 = arith.constant 0 : i32
    %c0_i32_1 = arith.constant 0 : i32
    return %arg0, %c0_i32, %c0_i32_0 : i32, i32, i32
  }
  func.func @transform_1(%arg0: i32) -> (i32, i32) {
    %c0_i32 = arith.constant 0 : i32
    %c0_i32_0 = arith.constant 0 : i32
    %c0_i32_1 = arith.constant 0 : i32
    return %c0_i32, %c0_i32_0 : i32, i32
  }
  func.func @transform_2(%arg0: i32) -> (i32, i32) {
    %c0_i32 = arith.constant 0 : i32
    %c0_i32_0 = arith.constant 0 : i32
    %c0_i32_1 = arith.constant 0 : i32
    return %c0_i32, %c0_i32_0 : i32, i32
  }
  func.func @transform_3(%arg0: i32) -> (i32, i32) {
    %c0_i32 = arith.constant 0 : i32
    %c0_i32_0 = arith.constant 0 : i32
    %c0_i32_1 = arith.constant 0 : i32
    return %c0_i32, %c0_i32_0 : i32, i32
  }
  func.func @transform_4(%arg0: i32) -> (i32, i32) {
    %c0_i32 = arith.constant 0 : i32
    %c0_i32_0 = arith.constant 0 : i32
    %c0_i32_1 = arith.constant 0 : i32
    return %c0_i32, %c0_i32_0 : i32, i32
  }
  func.func @transform_5(%arg0: i32) -> (i32, i32, i32) {
    %c0_i32 = arith.constant 0 : i32
    %c0_i32_0 = arith.constant 0 : i32
    %c0_i32_1 = arith.constant 0 : i32
    return %arg0, %c0_i32, %c0_i32_0 : i32, i32, i32
  }
}

module attributes {stable_mosaic.version = 11 : i64} {
  func.func @_deconv_gn_gelu_kernel(%arg0: i32, %arg1: memref<2x8x32xbf16, #tpu.memory_space<vmem>>, %arg2: memref<32x96xbf16, #tpu.memory_space<vmem>>, %arg3: memref<1x32xf32, #tpu.memory_space<vmem>>, %arg4: memref<1x32xf32, #tpu.memory_space<vmem>>, %arg5: memref<1x32xf32, #tpu.memory_space<vmem>>, %arg6: memref<2x8x64xbf16, #tpu.memory_space<vmem>>) attributes {dimension_semantics = [#tpu.dimension_semantics<parallel>], iteration_bounds = array<i64: 1>, scalar_prefetch = 0 : i64, scratch_operands = 0 : i64, tpu.core_type = #tpu.core_type<tc>, window_params = [{transform_indices = @transform_0, window_bounds = array<i64: 2, 8, 32>}, {pipeline_mode = #tpu.pipeline_mode<synchronous>, transform_indices = @transform_1, window_bounds = array<i64: 32, 96>}, {pipeline_mode = #tpu.pipeline_mode<synchronous>, transform_indices = @transform_2, window_bounds = array<i64: 1, 32>}, {pipeline_mode = #tpu.pipeline_mode<synchronous>, transform_indices = @transform_3, window_bounds = array<i64: 1, 32>}, {pipeline_mode = #tpu.pipeline_mode<synchronous>, transform_indices = @transform_4, window_bounds = array<i64: 1, 32>}, {transform_indices = @transform_5, window_bounds = array<i64: 2, 8, 64>}]} {
    %c0 = arith.constant 0 : index
    %c0_0 = arith.constant 0 : index
    %c0_1 = arith.constant 0 : index
    %0 = vector.load %arg1[%c0, %c0_0, %c0_1] : memref<2x8x32xbf16, #tpu.memory_space<vmem>>, vector<2x8x32xbf16>
    %1 = vector.shape_cast %0 : vector<2x8x32xbf16> to vector<16x32xbf16>
    %c0_2 = arith.constant 0 : index
    %c0_3 = arith.constant 0 : index
    %2 = vector.load %arg2[%c0_2, %c0_3] : memref<32x96xbf16, #tpu.memory_space<vmem>>, vector<32x96xbf16>
    %cst = arith.constant dense<0.000000e+00> : vector<16x96xf32>
    %3 = tpu.matmul %1, %2, %cst {dimension_numbers = #tpu.dot_dimension_numbers<[1], [0], [0], [1], [0, 0, 1, 1], [], []>} : vector<16x32xbf16>, vector<32x96xbf16>, vector<16x96xf32> -> vector<16x96xf32>
    %4 = vector.extract_strided_slice %3 {offsets = [0, 0], sizes = [16, 32], strides = [1, 1]} : vector<16x96xf32> to vector<16x32xf32>
    %5 = vector.extract_strided_slice %3 {offsets = [0, 32], sizes = [16, 32], strides = [1, 1]} : vector<16x96xf32> to vector<16x32xf32>
    %6 = vector.extract_strided_slice %3 {offsets = [0, 64], sizes = [16, 32], strides = [1, 1]} : vector<16x96xf32> to vector<16x32xf32>
    %c15_i32 = arith.constant 15 : i32
    %7 = tpu.dynamic_rotate %6 by %c15_i32 dim 0 : vector<16x32xf32>, i32 -> vector<16x32xf32>
    %8 = vector.shape_cast %7 : vector<16x32xf32> to vector<2x8x32xf32>
    %9 = tpu.iota {dimensions = array<i32: 0>} : vector<8x32xi32>
    %c7_i32 = arith.constant 7 : i32
    %10 = vector.broadcast %c7_i32 : i32 to vector<8x32xi32>
    %11 = arith.cmpi slt, %9, %10 : vector<8x32xi32>
    %cst_4 = arith.constant 0.000000e+00 : f32
    %12 = vector.shape_cast %11 : vector<8x32xi1> to vector<1x8x32xi1>
    %13 = vector.broadcast %12 : vector<1x8x32xi1> to vector<2x8x32xi1>
    %14 = vector.broadcast %cst_4 : f32 to vector<2x8x32xf32>
    %15 = arith.select %13, %8, %14 : vector<2x8x32xi1>, vector<2x8x32xf32>
    %c0_5 = arith.constant 0 : index
    %c0_6 = arith.constant 0 : index
    %16 = vector.load %arg3[%c0_5, %c0_6] : memref<1x32xf32, #tpu.memory_space<vmem>>, vector<1x32xf32>
    %17 = vector.shape_cast %4 : vector<16x32xf32> to vector<2x8x32xf32>
    %18 = vector.shape_cast %16 : vector<1x32xf32> to vector<1x1x32xf32>
    %19 = vector.broadcast %18 : vector<1x1x32xf32> to vector<2x8x32xf32>
    %20 = arith.addf %17, %19 : vector<2x8x32xf32>
    %21 = vector.shape_cast %5 : vector<16x32xf32> to vector<2x8x32xf32>
    %22 = arith.addf %21, %15 : vector<2x8x32xf32>
    %23 = vector.shape_cast %16 : vector<1x32xf32> to vector<1x1x32xf32>
    %24 = vector.broadcast %23 : vector<1x1x32xf32> to vector<2x8x32xf32>
    %25 = arith.addf %22, %24 : vector<2x8x32xf32>
    %cst_7 = arith.constant dense<0.000000e+00> : vector<2x8xf32>
    %26 = vector.multi_reduction <add>, %20, %cst_7 [2] : vector<2x8x32xf32> to vector<2x8xf32>
    %27 = vector.shape_cast %26 : vector<2x8xf32> to vector<2x8x1xf32>
    %cst_8 = arith.constant dense<0.000000e+00> : vector<2x1xf32>
    %28 = vector.multi_reduction <add>, %27, %cst_8 [1] : vector<2x8x1xf32> to vector<2x1xf32>
    %29 = vector.shape_cast %28 : vector<2x1xf32> to vector<2x1x1xf32>
    %cst_9 = arith.constant dense<0.000000e+00> : vector<2x8xf32>
    %30 = vector.multi_reduction <add>, %25, %cst_9 [2] : vector<2x8x32xf32> to vector<2x8xf32>
    %31 = vector.shape_cast %30 : vector<2x8xf32> to vector<2x8x1xf32>
    %cst_10 = arith.constant dense<0.000000e+00> : vector<2x1xf32>
    %32 = vector.multi_reduction <add>, %31, %cst_10 [1] : vector<2x8x1xf32> to vector<2x1xf32>
    %33 = vector.shape_cast %32 : vector<2x1xf32> to vector<2x1x1xf32>
    %34 = arith.addf %29, %33 : vector<2x1x1xf32>
    %35 = arith.mulf %20, %20 : vector<2x8x32xf32>
    %cst_11 = arith.constant dense<0.000000e+00> : vector<2x8xf32>
    %36 = vector.multi_reduction <add>, %35, %cst_11 [2] : vector<2x8x32xf32> to vector<2x8xf32>
    %37 = vector.shape_cast %36 : vector<2x8xf32> to vector<2x8x1xf32>
    %cst_12 = arith.constant dense<0.000000e+00> : vector<2x1xf32>
    %38 = vector.multi_reduction <add>, %37, %cst_12 [1] : vector<2x8x1xf32> to vector<2x1xf32>
    %39 = vector.shape_cast %38 : vector<2x1xf32> to vector<2x1x1xf32>
    %40 = arith.mulf %25, %25 : vector<2x8x32xf32>
    %cst_13 = arith.constant dense<0.000000e+00> : vector<2x8xf32>
    %41 = vector.multi_reduction <add>, %40, %cst_13 [2] : vector<2x8x32xf32> to vector<2x8xf32>
    %42 = vector.shape_cast %41 : vector<2x8xf32> to vector<2x8x1xf32>
    %cst_14 = arith.constant dense<0.000000e+00> : vector<2x1xf32>
    %43 = vector.multi_reduction <add>, %42, %cst_14 [1] : vector<2x8x1xf32> to vector<2x1xf32>
    %44 = vector.shape_cast %43 : vector<2x1xf32> to vector<2x1x1xf32>
    %45 = arith.addf %39, %44 : vector<2x1x1xf32>
    %cst_15 = arith.constant 0.001953125 : f32
    %46 = vector.broadcast %cst_15 : f32 to vector<2x1x1xf32>
    %47 = arith.mulf %34, %46 : vector<2x1x1xf32>
    %cst_16 = arith.constant 0.001953125 : f32
    %48 = vector.broadcast %cst_16 : f32 to vector<2x1x1xf32>
    %49 = arith.mulf %45, %48 : vector<2x1x1xf32>
    %50 = arith.mulf %47, %47 : vector<2x1x1xf32>
    %51 = arith.subf %49, %50 : vector<2x1x1xf32>
    %cst_17 = arith.constant 0.000000e+00 : f32
    %52 = vector.broadcast %cst_17 : f32 to vector<2x1x1xf32>
    %53 = arith.maximumf %51, %52 : vector<2x1x1xf32>
    %cst_18 = arith.constant 9.99999974E-6 : f32
    %54 = vector.broadcast %cst_18 : f32 to vector<2x1x1xf32>
    %55 = arith.addf %53, %54 : vector<2x1x1xf32>
    %56 = math.rsqrt %55 : vector<2x1x1xf32>
    %c0_19 = arith.constant 0 : index
    %c0_20 = arith.constant 0 : index
    %57 = vector.load %arg4[%c0_19, %c0_20] : memref<1x32xf32, #tpu.memory_space<vmem>>, vector<1x32xf32>
    %58 = vector.shape_cast %57 : vector<1x32xf32> to vector<1x1x32xf32>
    %59 = vector.broadcast %56 : vector<2x1x1xf32> to vector<2x1x32xf32>
    %60 = vector.broadcast %58 : vector<1x1x32xf32> to vector<2x1x32xf32>
    %61 = arith.mulf %59, %60 : vector<2x1x32xf32>
    %c0_21 = arith.constant 0 : index
    %c0_22 = arith.constant 0 : index
    %62 = vector.load %arg5[%c0_21, %c0_22] : memref<1x32xf32, #tpu.memory_space<vmem>>, vector<1x32xf32>
    %63 = vector.broadcast %47 : vector<2x1x1xf32> to vector<2x1x32xf32>
    %64 = arith.mulf %63, %61 : vector<2x1x32xf32>
    %65 = vector.shape_cast %62 : vector<1x32xf32> to vector<1x1x32xf32>
    %66 = vector.broadcast %65 : vector<1x1x32xf32> to vector<2x1x32xf32>
    %67 = arith.subf %66, %64 : vector<2x1x32xf32>
    %68 = vector.broadcast %61 : vector<2x1x32xf32> to vector<2x8x32xf32>
    %69 = arith.mulf %20, %68 : vector<2x8x32xf32>
    %70 = vector.broadcast %67 : vector<2x1x32xf32> to vector<2x8x32xf32>
    %71 = arith.addf %69, %70 : vector<2x8x32xf32>
    %72 = arith.mulf %71, %71 : vector<2x8x32xf32>
    %73 = arith.mulf %71, %72 : vector<2x8x32xf32>
    %cst_23 = arith.constant 4.471500e-02 : f32
    %74 = vector.broadcast %cst_23 : f32 to vector<2x8x32xf32>
    %75 = arith.mulf %74, %73 : vector<2x8x32xf32>
    %76 = arith.addf %71, %75 : vector<2x8x32xf32>
    %cst_24 = arith.constant 0.797884583 : f32
    %77 = vector.broadcast %cst_24 : f32 to vector<2x8x32xf32>
    %78 = arith.mulf %77, %76 : vector<2x8x32xf32>
    %79 = math.tanh %78 : vector<2x8x32xf32>
    %cst_25 = arith.constant 1.000000e+00 : f32
    %80 = vector.broadcast %cst_25 : f32 to vector<2x8x32xf32>
    %81 = arith.addf %80, %79 : vector<2x8x32xf32>
    %cst_26 = arith.constant 5.000000e-01 : f32
    %82 = vector.broadcast %cst_26 : f32 to vector<2x8x32xf32>
    %83 = arith.mulf %82, %81 : vector<2x8x32xf32>
    %84 = arith.mulf %71, %83 : vector<2x8x32xf32>
    %85 = vector.broadcast %61 : vector<2x1x32xf32> to vector<2x8x32xf32>
    %86 = arith.mulf %25, %85 : vector<2x8x32xf32>
    %87 = vector.broadcast %67 : vector<2x1x32xf32> to vector<2x8x32xf32>
    %88 = arith.addf %86, %87 : vector<2x8x32xf32>
    %89 = arith.mulf %88, %88 : vector<2x8x32xf32>
    %90 = arith.mulf %88, %89 : vector<2x8x32xf32>
    %cst_27 = arith.constant 4.471500e-02 : f32
    %91 = vector.broadcast %cst_27 : f32 to vector<2x8x32xf32>
    %92 = arith.mulf %91, %90 : vector<2x8x32xf32>
    %93 = arith.addf %88, %92 : vector<2x8x32xf32>
    %cst_28 = arith.constant 0.797884583 : f32
    %94 = vector.broadcast %cst_28 : f32 to vector<2x8x32xf32>
    %95 = arith.mulf %94, %93 : vector<2x8x32xf32>
    %96 = math.tanh %95 : vector<2x8x32xf32>
    %cst_29 = arith.constant 1.000000e+00 : f32
    %97 = vector.broadcast %cst_29 : f32 to vector<2x8x32xf32>
    %98 = arith.addf %97, %96 : vector<2x8x32xf32>
    %cst_30 = arith.constant 5.000000e-01 : f32
    %99 = vector.broadcast %cst_30 : f32 to vector<2x8x32xf32>
    %100 = arith.mulf %99, %98 : vector<2x8x32xf32>
    %101 = arith.mulf %88, %100 : vector<2x8x32xf32>
    %102 = arith.truncf %84 : vector<2x8x32xf32> to vector<2x8x32xbf16>
    %c0_31 = arith.constant 0 : index
    %c0_32 = arith.constant 0 : index
    %c0_33 = arith.constant 0 : index
    %103 = vector.load %arg6[%c0_31, %c0_32, %c0_33] : memref<2x8x64xbf16, #tpu.memory_space<vmem>>, vector<2x8x32xbf16>
    tpu.vector_store %arg6[%c0_31, %c0_32, %c0_33], %102 {strides = array<i32>} : memref<2x8x64xbf16, #tpu.memory_space<vmem>>, vector<2x8x32xbf16>,
    %104 = arith.truncf %101 : vector<2x8x32xf32> to vector<2x8x32xbf16>
    %c0_34 = arith.constant 0 : index
    %c0_35 = arith.constant 0 : index
    %c32 = arith.constant 32 : index
    %105 = vector.load %arg6[%c0_34, %c0_35, %c32] : memref<2x8x64xbf16, #tpu.memory_space<vmem>>, vector<2x8x32xbf16>
    tpu.vector_store %arg6[%c0_34, %c0_35, %c32], %104 {strides = array<i32>} : memref<2x8x64xbf16, #tpu.memory_space<vmem>>, vector<2x8x32xbf16>,
    return
  }
  func.func @transform_0(%arg0: i32) -> (i32, i32, i32) {
    %c0_i32 = arith.constant 0 : i32
    %c0_i32_0 = arith.constant 0 : i32
    %c0_i32_1 = arith.constant 0 : i32
    return %arg0, %c0_i32, %c0_i32_0 : i32, i32, i32
  }
  func.func @transform_1(%arg0: i32) -> (i32, i32) {
    %c0_i32 = arith.constant 0 : i32
    %c0_i32_0 = arith.constant 0 : i32
    %c0_i32_1 = arith.constant 0 : i32
    return %c0_i32, %c0_i32_0 : i32, i32
  }
  func.func @transform_2(%arg0: i32) -> (i32, i32) {
    %c0_i32 = arith.constant 0 : i32
    %c0_i32_0 = arith.constant 0 : i32
    %c0_i32_1 = arith.constant 0 : i32
    return %c0_i32, %c0_i32_0 : i32, i32
  }
  func.func @transform_3(%arg0: i32) -> (i32, i32) {
    %c0_i32 = arith.constant 0 : i32
    %c0_i32_0 = arith.constant 0 : i32
    %c0_i32_1 = arith.constant 0 : i32
    return %c0_i32, %c0_i32_0 : i32, i32
  }
  func.func @transform_4(%arg0: i32) -> (i32, i32) {
    %c0_i32 = arith.constant 0 : i32
    %c0_i32_0 = arith.constant 0 : i32
    %c0_i32_1 = arith.constant 0 : i32
    return %c0_i32, %c0_i32_0 : i32, i32
  }
  func.func @transform_5(%arg0: i32) -> (i32, i32, i32) {
    %c0_i32 = arith.constant 0 : i32
    %c0_i32_0 = arith.constant 0 : i32
    %c0_i32_1 = arith.constant 0 : i32
    return %arg0, %c0_i32, %c0_i32_0 : i32, i32, i32
  }
}

</mosaic_0001>

<bundles_post_ra>
// kernel: conv_decoder_tueg_forward.3
= control target key start
LH: loop header
LB: loop body
LE: loop exit
PB: predicated region body
PF: predicated region fallthrough
CT: control target
= control target key end

     0   :  { %vm51_vm0 = vcmask 261120   ;;  %v127_v8 = vlaneseq  ;;  %s538_s28 = smov 96   ;;  %vm481_vm3 = vcmask 523520   ;;  %s703_s1 = inlined_call_operand.vmem [shape: bf16[32,96], index: 1, kind: input, shape index: {}]   ;;  %s704_s0 = inlined_call_operand.vmem [shape: bf16[2,16,32], index: 0, kind: input, shape index: {}]   ;;  %s705_s2 = inlined_call_operand.vmem [shape: f32[1,32], index: 2, kind: input, shape index: {}]   ;;  %s706_s3 = inlined_call_operand.vmem [shape: f32[1,32], index: 3, kind: input, shape index: {}]   ;;  %s707_s4 = inlined_call_operand.vmem [shape: f32[1,32], index: 4, kind: input, shape index: {}]   ;;  %s708_s5 = inlined_call_operand.vmem [shape: f32[2,16,64], index: 5, kind: output, shape index: {}]  }
   0x1   :  { %v512_v0 = vld [vmem:[%s703_s1 + $0x8] sm:$0xff]   ;;  %v513_v1 = vld [vmem:[%s703_s1] sm:$0xff]   ;;  %s536_s1 = smov 64  }
   0x2   :  { %501 = vmatprep.subr.bf16.mxu0 %v512_v0  ;;  %v514_v2 = vld [vmem:[%s704_s0] sm:$0xff]   ;;  %v515_v3 = vld [vmem:[%s704_s0 + $0x8] sm:$0xff]   ;;  %v586_v10 = vshrl.u32 %v127_v8, 7  ;;  %s537_s0 = smov 32  }
   0x3   :  { %502 = vmatpush3.bf16.msra.mxu0 %v512_v0  ;;  %505 = vmatprep.mubr.msk.bf16.mxu0 %vm51_vm0, %v514_v2  ;;  %v496_v25 = vld [vmem:[%s705_s2] ss:$0 sm:$0xff] }
   0x4   :  { %503 = vmatprep.subr.bf16.mxu0 %v513_v1  ;;  %vm129_vm1 = vcmp.lt.s32.totalorder %v586_v10, 7  ;;  %v134_v15 = vadd.s32 8, %v586_v10 }
   0x6   :  { %vm136_vm2 = vcmp.lt.s32.totalorder %v134_v15, 15 }
   0x7   :  { %504 = vmatpush3.bf16.msra.mxu0 %v513_v1 }
   0xa   :  { %506 = vmatmul.mubr.msk.bf16.vlgmr.msra.gmra.mxu0 %vm51_vm0, %v515_v3 }
  0xca   :  { %v583_v4 = vpop.f32.mrf.mxu0 }
  0xcb   :  { %115 = vrot.lane.b32.xlu1 %v583_v4, %s536_s1  ;;  %v622_v44 = vadd.f32 %v583_v4, %v496_v25 }
  0xcc   :  { %v92_v5 = vpop.f32.mrf.mxu0 }
  0xcd   :  { %111 = vrot.lane.b32.xlu0 %v92_v5, %s536_s1  ;;  %v624_v45 = vadd.f32 %v496_v25, %v92_v5  ;;  %v189_v49 = vsel %vm51_vm0, %v622_v44, 0.0  ;;  %v255_v54 = vmul.f32 %v622_v44, %v622_v44 }
  0xce   :  { %v508_v6 = vpop.f32.mrf.mxu0 }
  0xcf   :  { %117 = vrot.lane.b32.xlu1 %v508_v6, %s536_s1  ;;  %v628_v47 = vadd.f32 %v508_v6, %v496_v25  ;;  %v183_v48 = vsel %vm51_vm0, %v624_v45, 0.0  ;;  %v253_v50 = vmul.f32 %v624_v45, %v624_v45  ;;  %v263_v56 = vsel %vm51_vm0, %v255_v54, 0.0 }
  0xd0   :  { %v95_v7 = vpop.f32.mrf.mxu0 }
  0xd1   :  { %113 = vrot.lane.b32.xlu0 %v95_v7, %s536_s1  ;;  %v619_v43 = vadd.f32 %v496_v25, %v95_v7  ;;  %v192_v51 = vsel %vm51_vm0, %v628_v47, 0.0  ;;  %v257_v52 = vsel %vm51_vm0, %v253_v50, 0.0  ;;  %v256_v57 = vmul.f32 %v628_v47, %v628_v47 }
  0xd3   :  { %v186_v46 = vsel %vm51_vm0, %v619_v43, 0.0  ;;  %v254_v53 = vmul.f32 %v619_v43, %v619_v43  ;;  %v266_v58 = vsel %vm51_vm0, %v256_v57, 0.0 }
  0xd5   :  { %v260_v55 = vsel %vm51_vm0, %v254_v53, 0.0 }
 0x13d   :  { %v116_v9 = vpop.permute.xlu1 %115 }
 0x13e   :  { %v125_v13 = vrot.slane %v116_v9, 1 }
 0x13f   :  { %v112_v11 = vpop.permute.xlu0 %111 }
 0x140   :  { %v123_v19 = vrot.slane %v112_v11, 1 }
 0x141   :  { %v118_v12 = vpop.permute.xlu1 %117 }
 0x142   :  { %v126_v14 = vrot.slane %v118_v12, 1 }
 0x143   :  { %v114_v16 = vpop.permute.xlu0 %113 }
 0x144   :  { %v124_v17 = vrot.slane %v114_v16, 1  ;;  %v130_v18 = vsel %vm129_vm1, %v125_v13, %v126_v14  ;;  %v133_v23 = vsel %vm129_vm1, %v126_v14, %v123_v19 }
 0x145   :  { %164 = vrot.lane.b32.xlu0 %v130_v18, %s537_s0  ;;  %v144_v24 = vsel %vm136_vm2, %v133_v23, 0.0 }
 0x146   :  { %v131_v20 = vsel %vm129_vm1, %v124_v17, %v125_v13  ;;  %v132_v22 = vsel %vm129_vm1, %v123_v19, %v124_v17 }
 0x147   :  { %v142_v21 = vsel %vm136_vm2, %v131_v20, 0.0 }
 0x148   :  { %162 = vrot.lane.b32.xlu1 %v142_v21, %s537_s0 }
 0x149   :  { %160 = vrot.lane.b32.xlu0 %v132_v22, %s537_s0 }
 0x14c   :  { %166 = vrot.lane.b32.xlu1 %v144_v24, %s537_s0 }
 0x14d   :  { %176 = vrot.lane.b32.xlu0 %v496_v25, %s537_s0 }
 0x1b7   :  { %v165_v26 = vpop.permute.xlu0 %164 }
 0x1b8   :  { %v174_v29 = vadd.f32 %v583_v4, %v165_v26 }
 0x1ba   :  { %v163_v27 = vpop.permute.xlu1 %162 }
 0x1bb   :  { %v161_v28 = vpop.permute.xlu0 %160  ;;  %v173_v36 = vadd.f32 %v163_v27, %v95_v7 }
 0x1bc   :  { %v172_v35 = vadd.f32 %v161_v28, %v92_v5 }
 0x1be   :  { %v167_v30 = vpop.permute.xlu1 %166 }
 0x1bf   :  { %v175_v31 = vadd.f32 %v508_v6, %v167_v30  ;;  %v177_v32 = vpop.permute.xlu0 %176 }
 0x1c0   :  { %v599_v33 = vadd.f32 %v177_v32, %v174_v29  ;;  %v605_v37 = vadd.f32 %v177_v32, %v172_v35  ;;  %v607_v38 = vadd.f32 %v177_v32, %v173_v36 }
 0x1c1   :  { %v601_v34 = vadd.f32 %v177_v32, %v175_v31 }
 0x1c2   :  { %217 = vrot.lane.b32.xlu1 %v599_v33, %s538_s28  ;;  %v283_v39 = vmul.f32 %v605_v37, %v605_v37  ;;  %v284_v40 = vmul.f32 %v607_v38, %v607_v38  ;;  %v285_v41 = vmul.f32 %v599_v33, %v599_v33 }
 0x1c3   :  { %219 = vrot.lane.b32.xlu0 %v601_v34, %s538_s28  ;;  %v286_v42 = vmul.f32 %v601_v34, %v601_v34 }
 0x1c6   :  { %213 = vrot.lane.b32.xlu1 %v605_v37, %s538_s28 }
 0x1c7   :  { %215 = vrot.lane.b32.xlu0 %v607_v38, %s538_s28 }
 0x1ca   :  { %291 = vrot.lane.b32.xlu1 %v283_v39, %s538_s28 }
 0x1cb   :  { %293 = vrot.lane.b32.xlu0 %v284_v40, %s538_s28 }
 0x1ce   :  { %295 = vrot.lane.b32.xlu1 %v285_v41, %s538_s28 }
 0x1cf   :  { %297 = vrot.lane.b32.xlu0 %v286_v42, %s538_s28 }
 0x1ee   :  { %187 = vadd.xlane.f32.xlu0 %v186_v46 }
 0x1f2   :  { %184 = vadd.xlane.f32.xlu1 %v183_v48  ;;  %190 = vadd.xlane.f32.xlu0 %v189_v49 }
 0x1f6   :  { %193 = vadd.xlane.f32.xlu1 %v192_v51  ;;  %258 = vadd.xlane.f32.xlu0 %v257_v52 }
 0x1fa   :  { %261 = vadd.xlane.f32.xlu1 %v260_v55  ;;  %264 = vadd.xlane.f32.xlu0 %v263_v56 }
 0x1fe   :  { %267 = vadd.xlane.f32.xlu1 %v266_v58 }
 0x234   :  { %v218_v59 = vpop.permute.xlu1 %217 }
 0x235   :  { %v220_v60 = vpop.permute.xlu0 %219  ;;  %v231_v61 = vsel %vm51_vm0, %v218_v59, 0.0 }
 0x236   :  { %232 = vadd.xlane.f32.xlu0 %v231_v61  ;;  %v234_v62 = vsel %vm51_vm0, %v220_v60, 0.0 }
 0x237   :  { %235 = vadd.xlane.f32.xlu1 %v234_v62 }
 0x238   :  { %v214_v63 = vpop.permute.xlu1 %213 }
 0x239   :  { %v216_v0 = vpop.permute.xlu0 %215  ;;  %v225_v1 = vsel %vm51_vm0, %v214_v63, 0.0 }
 0x23a   :  { %226 = vadd.xlane.f32.xlu0 %v225_v1  ;;  %v228_v2 = vsel %vm51_vm0, %v216_v0, 0.0 }
 0x23b   :  { %229 = vadd.xlane.f32.xlu1 %v228_v2 }
 0x23c   :  { %v292_v3 = vpop.permute.xlu1 %291 }
 0x23d   :  { %v294_v4 = vpop.permute.xlu0 %293  ;;  %v303_v5 = vsel %vm51_vm0, %v292_v3, 0.0 }
 0x23e   :  { %304 = vadd.xlane.f32.xlu0 %v303_v5  ;;  %v306_v6 = vsel %vm51_vm0, %v294_v4, 0.0 }
 0x23f   :  { %307 = vadd.xlane.f32.xlu1 %v306_v6 }
 0x240   :  { %v296_v7 = vpop.permute.xlu1 %295 }
 0x241   :  { %v298_v8 = vpop.permute.xlu0 %297  ;;  %v309_v9 = vsel %vm51_vm0, %v296_v7, 0.0 }
 0x242   :  { %310 = vadd.xlane.f32.xlu0 %v309_v9  ;;  %v312_v11 = vsel %vm51_vm0, %v298_v8, 0.0 }
 0x243   :  { %313 = vadd.xlane.f32.xlu1 %v312_v11 }
 0x277   :  { %v188_v12 = vpop.xlane.xlu0 %187 }
 0x27b   :  { %v185_v13 = vpop.xlane.xlu1 %184  ;;  %v191_v14 = vpop.xlane.xlu0 %190 }
 0x27c   :  { %v195_v18 = vadd.f32 %v188_v12, %v185_v13 }
 0x27e   :  { %v196_v21 = vrot.slane %v195_v18, 4 }
 0x27f   :  { %v194_v15 = vpop.xlane.xlu1 %193  ;;  %v259_v16 = vpop.xlane.xlu0 %258 }
 0x280   :  { %v202_v19 = vadd.f32 %v194_v15, %v191_v14  ;;  %v197_v26 = vadd.f32 %v196_v21, %v195_v18 }
 0x282   :  { %v203_v24 = vrot.slane %v202_v19, 4  ;;  %v198_v36 = vrot.slane %v197_v26, 2 }
 0x283   :  { %v262_v17 = vpop.xlane.xlu1 %261  ;;  %v265_v20 = vpop.xlane.xlu0 %264 }
 0x284   :  { %v269_v22 = vadd.f32 %v262_v17, %v259_v16  ;;  %v204_v31 = vadd.f32 %v203_v24, %v202_v19  ;;  %v199_v52 = vadd.f32 %v198_v36, %v197_v26 }
 0x286   :  { %v270_v27 = vrot.slane %v269_v22, 4  ;;  %v205_v48 = vrot.slane %v204_v31, 2  ;;  %v200_v63 = vrot.slane %v199_v52, 1 }
 0x287   :  { %v268_v23 = vpop.xlane.xlu1 %267 }
 0x288   :  { %v276_v28 = vadd.f32 %v268_v23, %v265_v20  ;;  %v271_v39 = vadd.f32 %v270_v27, %v269_v22  ;;  %v206_v59 = vadd.f32 %v205_v48, %v204_v31  ;;  %v201_v12 = vadd.f32 %v200_v63, %v199_v52 }
 0x28a   :  { %v277_v40 = vrot.slane %v276_v28, 4  ;;  %v272_v53 = vrot.slane %v271_v39, 2  ;;  %v207_v7 = vrot.slane %v206_v59, 1 }
 0x28c   :  { %v278_v54 = vadd.f32 %v277_v40, %v276_v28  ;;  %v273_v0 = vadd.f32 %v272_v53, %v271_v39  ;;  %v208_v19 = vadd.f32 %v207_v7, %v206_v59  ;;  %v345_v53 = vld [vmem:[%s706_s3] sm:$0x1] }
 0x28e   :  { %v279_v1 = vrot.slane %v278_v54, 2  ;;  %v274_v13 = vrot.slane %v273_v0, 1 }
 0x290   :  { %v280_v14 = vadd.f32 %v279_v1, %v278_v54  ;;  %v275_v23 = vadd.f32 %v274_v13, %v273_v0  ;;  %v357_v54 = vsub.s32 0, %v586_v10 }
 0x292   :  { %v281_v24 = vrot.slane %v280_v14, 1 }
 0x294   :  { %v282_v31 = vadd.f32 %v281_v24, %v280_v14 }
 0x2bf   :  { %v233_v25 = vpop.xlane.xlu0 %232 }
 0x2c0   :  { %v236_v29 = vpop.xlane.xlu1 %235 }
 0x2c1   :  { %v244_v30 = vadd.f32 %v236_v29, %v233_v25 }
 0x2c3   :  { %v245_v32 = vrot.slane %v244_v30, 4  ;;  %v227_v35 = vpop.xlane.xlu0 %226 }
 0x2c4   :  { %v230_v41 = vpop.xlane.xlu1 %229 }
 0x2c5   :  { %v246_v42 = vadd.f32 %v245_v32, %v244_v30  ;;  %v237_v46 = vadd.f32 %v230_v41, %v227_v35 }
 0x2c7   :  { %v247_v49 = vrot.slane %v246_v42, 2  ;;  %v238_v50 = vrot.slane %v237_v46, 4  ;;  %v305_v51 = vpop.xlane.xlu0 %304 }
 0x2c8   :  { %v308_v55 = vpop.xlane.xlu1 %307 }
 0x2c9   :  { %v248_v56 = vadd.f32 %v247_v49, %v246_v42  ;;  %v239_v57 = vadd.f32 %v238_v50, %v237_v46  ;;  %v315_v58 = vadd.f32 %v308_v55, %v305_v51 }
 0x2cb   :  { %v240_v60 = vrot.slane %v239_v57, 2  ;;  %v316_v61 = vrot.slane %v315_v58, 4  ;;  %v311_v62 = vpop.xlane.xlu0 %310  ;;  %v249_v3 = vrot.slane %v248_v56, 1 }
 0x2cc   :  { %v314_v2 = vpop.xlane.xlu1 %313 }
 0x2cd   :  { %v241_v4 = vadd.f32 %v240_v60, %v239_v57  ;;  %v317_v5 = vadd.f32 %v316_v61, %v315_v58  ;;  %v322_v6 = vadd.f32 %v314_v2, %v311_v62  ;;  %v250_v15 = vadd.f32 %v249_v3, %v248_v56  ;;  %v348_v57 = vld [vmem:[%s707_s4] sm:$0x1] }
 0x2cf   :  { %v242_v8 = vrot.slane %v241_v4, 1  ;;  %v318_v9 = vrot.slane %v317_v5, 2  ;;  %v323_v11 = vrot.slane %v322_v6, 4  ;;  %v252_v25 = vadd.f32 %v250_v15, %v208_v19 }
 0x2d1   :  { %v243_v16 = vadd.f32 %v242_v8, %v241_v4  ;;  %v319_v17 = vadd.f32 %v318_v9, %v317_v5  ;;  %v324_v18 = vadd.f32 %v323_v11, %v322_v6  ;;  %v332_v32 = vmul.f32 0.0009765625, %v252_v25 }
 0x2d3   :  { %v251_v20 = vadd.f32 %v243_v16, %v201_v12  ;;  %v320_v21 = vrot.slane %v319_v17, 1  ;;  %v325_v22 = vrot.slane %v324_v18, 2  ;;  %v336_v42 = vmul.f32 %v332_v32, %v332_v32 }
 0x2d5   :  { %v331_v26 = vmul.f32 0.0009765625, %v251_v20  ;;  %v321_v27 = vadd.f32 %v320_v21, %v319_v17  ;;  %v326_v28 = vadd.f32 %v325_v22, %v324_v18 }
 0x2d7   :  { %v329_v29 = vadd.f32 %v321_v27, %v275_v23  ;;  %v327_v30 = vrot.slane %v326_v28, 1  ;;  %v335_v35 = vmul.f32 %v331_v26, %v331_v26 }
 0x2d9   :  { %v333_v36 = vmul.f32 0.0009765625, %v329_v29  ;;  %v328_v39 = vadd.f32 %v327_v30, %v326_v28 }
 0x2db   :  { %v337_v40 = vsub.f32 %v333_v36, %v335_v35  ;;  %v330_v41 = vadd.f32 %v328_v39, %v282_v31 }
 0x2dd   :  { %v339_v46 = vmax.f32 %v337_v40, 0.0  ;;  %v334_v48 = vmul.f32 0.0009765625, %v330_v41 }
 0x2df   :  { %v341_v49 = vadd.f32 1e-05, %v339_v46  ;;  %v338_v50 = vsub.f32 %v334_v48, %v336_v42 }
 0x2e1   :  { %516 = vrsqrt.f32 %v341_v49  ;;  %v340_v51 = vmax.f32 %v338_v50, 0.0 }
 0x2e3   :  { %v342_v52 = vadd.f32 1e-05, %v340_v51 }
 0x2e5   :  { %518 = vrsqrt.f32 %v342_v52 }
 0x2ee   :  { %v517_v55 = vpop.eup %516 }
 0x2ef   :  { %v346_v56 = vmul.f32 %v517_v55, %v345_v53 }
 0x2f1   :  { %v358_v58 = vrot.slane %v346_v56, %v357_v54  ;;  %v349_v59 = vmul.f32 %v346_v56, %v331_v26 }
 0x2f2   :  { %v519_v60 = vpop.eup %518 }
 0x2f3   :  { %421 = vrot.lane.b32.xlu0 %v358_v58, %s537_s0  ;;  %v347_v61 = vmul.f32 %v519_v60, %v345_v53  ;;  %v351_v62 = vsub.f32 %v348_v57, %v349_v59  ;;  %v365_v63 = vmul.f32 %v358_v58, %v624_v45  ;;  %v366_v0 = vmul.f32 %v358_v58, %v619_v43 }
 0x2f5   :  { %v362_v1 = vrot.slane %v347_v61, %v357_v54  ;;  %v374_v2 = vrot.slane %v351_v62, %v357_v54  ;;  %v350_v10 = vmul.f32 %v347_v61, %v332_v32 }
 0x2f7   :  { %423 = vrot.lane.b32.xlu1 %v362_v1, %s537_s0  ;;  %v381_v3 = vadd.f32 %v374_v2, %v365_v63  ;;  %v382_v4 = vadd.f32 %v374_v2, %v366_v0  ;;  %v352_v5 = vsub.f32 %v348_v57, %v350_v10  ;;  %v367_v8 = vmul.f32 %v362_v1, %v622_v44 }
 0x2f8   :  { %v368_v9 = vmul.f32 %v362_v1, %v628_v47 }
 0x2f9   :  { %v385_v6 = vmul.f32 %v381_v3, %v381_v3  ;;  %v386_v7 = vmul.f32 %v382_v4, %v382_v4  ;;  %v378_v11 = vrot.slane %v352_v5, %v357_v54 }
 0x2fb   :  { %v389_v12 = vmul.f32 %v385_v6, %v381_v3  ;;  %v390_v13 = vmul.f32 %v386_v7, %v382_v4  ;;  %431 = vrot.lane.b32.xlu1 %v374_v2, %s537_s0  ;;  %433 = vrot.lane.b32.xlu0 %v378_v11, %s537_s0  ;;  %v383_v43 = vadd.f32 %v378_v11, %v367_v8 }
 0x2fc   :  { %v384_v45 = vadd.f32 %v378_v11, %v368_v9 }
 0x2fd   :  { %v393_v14 = vmul.f32 0.044715, %v389_v12  ;;  %v394_v15 = vmul.f32 0.044715, %v390_v13  ;;  %v387_v16 = vmul.f32 %v383_v43, %v383_v43 }
 0x2fe   :  { %v388_v17 = vmul.f32 %v384_v45, %v384_v45 }
 0x2ff   :  { %v397_v18 = vadd.f32 %v393_v14, %v381_v3  ;;  %v398_v19 = vadd.f32 %v394_v15, %v382_v4  ;;  %v391_v20 = vmul.f32 %v387_v16, %v383_v43 }
 0x300   :  { %v392_v21 = vmul.f32 %v388_v17, %v384_v45 }
 0x301   :  { %v401_v44 = vmul.f32 0.7978846, %v397_v18  ;;  %v402_v22 = vmul.f32 0.7978846, %v398_v19  ;;  %v395_v47 = vmul.f32 0.044715, %v391_v20 }
 0x302   :  { %v396_v23 = vmul.f32 0.044715, %v392_v21 }
 0x303   :  { %520 = vtanh.f32 %v401_v44  ;;  %v399_v24 = vadd.f32 %v395_v47, %v383_v43 }
 0x304   :  { %522 = vtanh.f32 %v402_v22  ;;  %v400_v25 = vadd.f32 %v396_v23, %v384_v45 }
 0x305   :  { %v403_v26 = vmul.f32 0.7978846, %v399_v24 }
 0x306   :  { %v404_v27 = vmul.f32 0.7978846, %v400_v25 }
 0x307   :  { %524 = vtanh.f32 %v403_v26 }
 0x308   :  { %526 = vtanh.f32 %v404_v27 }
 0x310   :  { %v521_v28 = vpop.eup %520 }
 0x311   :  { %v523_v29 = vpop.eup %522  ;;  %v409_v30 = vadd.f32 1.0, %v521_v28 }
 0x312   :  { %v410_v31 = vadd.f32 1.0, %v523_v29 }
 0x313   :  { %v413_v32 = vmul.f32 0.5, %v409_v30 }
 0x314   :  { %v414_v35 = vmul.f32 0.5, %v410_v31  ;;  %v525_v36 = vpop.eup %524 }
 0x315   :  { %v417_v39 = vmul.f32 %v413_v32, %v381_v3  ;;  %v527_v40 = vpop.eup %526  ;;  %v411_v42 = vadd.f32 1.0, %v525_v36 }
 0x316   :  { %v418_v41 = vmul.f32 %v414_v35, %v382_v4  ;;  %v412_v46 = vadd.f32 1.0, %v527_v40 }
 0x317   :  { %477 = vst.msk [vmem:[%s708_s5] sm:$0xff] %vm51_vm0, %v417_v39  ;;  %v415_v48 = vmul.f32 0.5, %v411_v42 }
 0x318   :  { %478 = vst.msk [vmem:[%s708_s5 + $0x8] sm:$0xff] %vm51_vm0, %v418_v41  ;;  %v416_v49 = vmul.f32 0.5, %v412_v46 }
 0x319   :  { %v419_v50 = vmul.f32 %v415_v48, %v383_v43 }
 0x31a   :  { %v420_v51 = vmul.f32 %v416_v49, %v384_v45 }
 0x31b   :  { %479 = vst.msk [vmem:[%s708_s5 + $0x10] sm:$0xff] %vm51_vm0, %v419_v50 }
 0x31c   :  { %480 = vst.msk [vmem:[%s708_s5 + $0x18] sm:$0xff] %vm51_vm0, %v420_v51 }
 0x365   :  { %v422_v52 = vpop.permute.xlu0 %421 }
 0x366   :  { %v427_v54 = vmul.f32 %v422_v52, %v605_v37  ;;  %v428_v55 = vmul.f32 %v422_v52, %v607_v38 }
 0x369   :  { %v424_v53 = vpop.permute.xlu1 %423 }
 0x36a   :  { %v429_v56 = vmul.f32 %v424_v53, %v599_v33  ;;  %v430_v57 = vmul.f32 %v424_v53, %v601_v34 }
 0x36d   :  { %v432_v58 = vpop.permute.xlu1 %431  ;;  %v434_v61 = vpop.permute.xlu0 %433 }
 0x36e   :  { %v437_v59 = vadd.f32 %v432_v58, %v427_v54  ;;  %v438_v60 = vadd.f32 %v432_v58, %v428_v55  ;;  %v439_v62 = vadd.f32 %v434_v61, %v429_v56  ;;  %v440_v63 = vadd.f32 %v434_v61, %v430_v57 }
 0x370   :  { %v441_v0 = vmul.f32 %v437_v59, %v437_v59  ;;  %v442_v1 = vmul.f32 %v438_v60, %v438_v60  ;;  %v443_v2 = vmul.f32 %v439_v62, %v439_v62  ;;  %v444_v10 = vmul.f32 %v440_v63, %v440_v63 }
 0x372   :  { %v445_v3 = vmul.f32 %v441_v0, %v437_v59  ;;  %v446_v4 = vmul.f32 %v442_v1, %v438_v60  ;;  %v447_v5 = vmul.f32 %v443_v2, %v439_v62  ;;  %v448_v37 = vmul.f32 %v444_v10, %v440_v63 }
 0x374   :  { %v449_v6 = vmul.f32 0.044715, %v445_v3  ;;  %v450_v38 = vmul.f32 0.044715, %v446_v4  ;;  %v451_v7 = vmul.f32 0.044715, %v447_v5 }
 0x375   :  { %v452_v33 = vmul.f32 0.044715, %v448_v37 }
 0x376   :  { %v453_v8 = vadd.f32 %v449_v6, %v437_v59  ;;  %v454_v34 = vadd.f32 %v450_v38, %v438_v60  ;;  %v455_v9 = vadd.f32 %v451_v7, %v439_v62 }
 0x377   :  { %v456_v11 = vadd.f32 %v452_v33, %v440_v63 }
 0x378   :  { %v457_v12 = vmul.f32 0.7978846, %v453_v8  ;;  %v458_v13 = vmul.f32 0.7978846, %v454_v34  ;;  %v459_v43 = vmul.f32 0.7978846, %v455_v9 }
 0x379   :  { %v460_v45 = vmul.f32 0.7978846, %v456_v11 }
 0x37a   :  { %528 = vtanh.f32 %v457_v12 }
 0x37b   :  { %530 = vtanh.f32 %v458_v13 }
 0x37c   :  { %532 = vtanh.f32 %v459_v43 }
 0x37d   :  { %534 = vtanh.f32 %v460_v45 }
 0x387   :  { %v529_v14 = vpop.eup %528 }
 0x388   :  { %v531_v15 = vpop.eup %530  ;;  %v465_v16 = vadd.f32 1.0, %v529_v14 }
 0x389   :  { %v533_v17 = vpop.eup %532  ;;  %v466_v18 = vadd.f32 1.0, %v531_v15 }
 0x38a   :  { %v535_v19 = vpop.eup %534  ;;  %v469_v20 = vmul.f32 0.5, %v465_v16  ;;  %v467_v21 = vadd.f32 1.0, %v533_v17 }
 0x38b   :  { %v470_v44 = vmul.f32 0.5, %v466_v18  ;;  %v468_v22 = vadd.f32 1.0, %v535_v19 }
 0x38c   :  { %v473_v47 = vmul.f32 %v469_v20, %v437_v59  ;;  %v471_v23 = vmul.f32 0.5, %v467_v21 }
 0x38d   :  { %v474_v24 = vmul.f32 %v470_v44, %v438_v60  ;;  %v472_v25 = vmul.f32 0.5, %v468_v22 }
 0x38e   :  { %482 = vst.msk [vmem:[%s708_s5] sm:$0xff] %vm481_vm3, %v473_v47  ;;  %v475_v26 = vmul.f32 %v471_v23, %v439_v62 }
 0x38f   :  { %483 = vst.msk [vmem:[%s708_s5 + $0x8] sm:$0xff] %vm481_vm3, %v474_v24  ;;  %v476_v27 = vmul.f32 %v472_v25, %v440_v63 }
 0x390   :  { %484 = vst.msk [vmem:[%s708_s5 + $0x10] sm:$0xff] %vm481_vm3, %v475_v26 }
 0x391   :  { %485 = vst.msk [vmem:[%s708_s5 + $0x18] sm:$0xff] %vm481_vm3, %v476_v27 }

// kernel: conv_decoder_tueg_forward.2
= control target key start
LH: loop header
LB: loop body
LE: loop exit
PB: predicated region body
PF: predicated region fallthrough
CT: control target
= control target key end

     0   :  { %v380_v0 = vmov 0.0   ;;  %vm381_vm0 = vmmov 0   ;;  %vm44_vm1 = vcmask 261120   ;;  %s382_s24 = smov 64   ;;  %v99_v9 = vlaneseq  ;;  %s489_s1 = inlined_call_operand.vmem [shape: bf16[32,96], index: 1, kind: input, shape index: {}]   ;;  %s490_s0 = inlined_call_operand.vmem [shape: bf16[2,8,32], index: 0, kind: input, shape index: {}]   ;;  %s491_s2 = inlined_call_operand.vmem [shape: f32[1,32], index: 2, kind: input, shape index: {}]   ;;  %s492_s3 = inlined_call_operand.vmem [shape: f32[1,32], index: 3, kind: input, shape index: {}]   ;;  %s493_s4 = inlined_call_operand.vmem [shape: f32[1,32], index: 4, kind: input, shape index: {}]   ;;  %s494_s5 = inlined_call_operand.vmem [shape: bf16[2,8,64], index: 5, kind: output, shape index: {}]  }
   0x1   :  { %352 = vmatprep.subr.bf16.mxu0 %v380_v0  ;;  %v365_v1 = vld [vmem:[%s489_s1 + $0x8] sm:$0xff]   ;;  %356 = vmatprep.mubr.msk.bf16.mxu0 %vm381_vm0, %v380_v0  ;;  %v366_v2 = vld [vmem:[%s489_s1] sm:$0xff]   ;;  %s383_s1 = smov 32   ;;  %vm332_vm3 = vcmask 257024   ;;  %vm337_vm4 = vcmask 519424  }
   0x2   :  { %353 = vmatpush3.bf16.msra.mxu0 %v365_v1  ;;  %v367_v3 = vld [vmem:[%s490_s0] sm:$0xff]   ;;  %v429_v11 = vshrl.u32 %v99_v9, 7  ;;  %s384_s0 = smov 96  }
   0x3   :  { %354 = vmatprep.subr.bf16.mxu0 %v380_v0  ;;  %v348_v8 = vld [vmem:[%s491_s2] ss:$0 sm:$0xff] }
   0x4   :  { %vm101_vm2 = vcmp.lt.s32.totalorder %v429_v11, 7 }
   0x6   :  { %355 = vmatpush3.bf16.msra.mxu0 %v366_v2 }
   0x9   :  { %357 = vmatmul.mubr.msk.bf16.vlgmr.msra.gmra.mxu0 %vm44_vm1, %v367_v3 }
  0xc9   :  { %v82_v4 = vpop.f32.mrf.mxu0 }
  0xca   :  { %91 = vrot.lane.b32.xlu0 %v82_v4, %s382_s24  ;;  %v444_v28 = vadd.f32 %v348_v8, %v82_v4 }
  0xcb   :  { %v358_v5 = vpop.f32.mrf.mxu0 }
  0xcc   :  { %v178_v31 = vmul.f32 %v444_v28, %v444_v28  ;;  %v132_v32 = vsel %vm44_vm1, %v444_v28, 0.0 }
  0xcd   :  { %v85_v6 = vpop.f32.mrf.mxu0 }
  0xce   :  { %93 = vrot.lane.b32.xlu0 %v85_v6, %s382_s24  ;;  %v446_v29 = vadd.f32 %v348_v8, %v85_v6  ;;  %v180_v34 = vsel %vm44_vm1, %v178_v31, 0.0 }
  0xcf   :  { %v359_v7 = vpop.f32.mrf.mxu0 }
  0xd0   :  { %v135_v30 = vsel %vm44_vm1, %v446_v29, 0.0  ;;  %v179_v33 = vmul.f32 %v446_v29, %v446_v29 }
  0xd2   :  { %127 = vrot.lane.b32.xlu0 %v348_v8, %s383_s1  ;;  %v183_v35 = vsel %vm44_vm1, %v179_v33, 0.0 }
 0x13c   :  { %v92_v10 = vpop.permute.xlu0 %91 }
 0x13d   :  { %v97_v13 = vrot.slane %v92_v10, 1 }
 0x140   :  { %v94_v12 = vpop.permute.xlu0 %93 }
 0x141   :  { %v98_v14 = vrot.slane %v94_v12, 1 }
 0x143   :  { %v102_v15 = vsel %vm101_vm2, %v97_v13, %v98_v14  ;;  %v103_v17 = vsel %vm101_vm2, %v98_v14, %v97_v13 }
 0x144   :  { %v106_v16 = vsel %vm101_vm2, %v102_v15, 0.0  ;;  %v107_v18 = vsel %vm101_vm2, %v103_v17, 0.0  ;;  %v128_v20 = vpop.permute.xlu0 %127 }
 0x145   :  { %119 = vrot.lane.b32.xlu1 %v106_v16, %s383_s1 }
 0x149   :  { %121 = vrot.lane.b32.xlu1 %v107_v18, %s383_s1 }
 0x1b7   :  { %v120_v19 = vpop.permute.xlu1 %119 }
 0x1b8   :  { %v125_v21 = vadd.f32 %v120_v19, %v82_v4 }
 0x1ba   :  { %v434_v22 = vadd.f32 %v128_v20, %v125_v21 }
 0x1bb   :  { %v122_v23 = vpop.permute.xlu1 %121 }
 0x1bc   :  { %v126_v24 = vadd.f32 %v122_v23, %v85_v6  ;;  %152 = vrot.lane.b32.xlu1 %v434_v22, %s384_s0  ;;  %v198_v26 = vmul.f32 %v434_v22, %v434_v22 }
 0x1be   :  { %v437_v25 = vadd.f32 %v128_v20, %v126_v24 }
 0x1c0   :  { %154 = vrot.lane.b32.xlu0 %v437_v25, %s384_s0  ;;  %202 = vrot.lane.b32.xlu1 %v198_v26, %s384_s0  ;;  %v199_v27 = vmul.f32 %v437_v25, %v437_v25 }
 0x1c4   :  { %204 = vrot.lane.b32.xlu0 %v199_v27, %s384_s0 }
 0x1e3   :  { %136 = vadd.xlane.f32.xlu0 %v135_v30 }
 0x1e4   :  { %133 = vadd.xlane.f32.xlu1 %v132_v32 }
 0x1e7   :  { %181 = vadd.xlane.f32.xlu0 %v180_v34 }
 0x1e8   :  { %184 = vadd.xlane.f32.xlu1 %v183_v35 }
 0x22e   :  { %v153_v36 = vpop.permute.xlu1 %152 }
 0x22f   :  { %v158_v37 = vsel %vm44_vm1, %v153_v36, 0.0 }
 0x230   :  { %159 = vadd.xlane.f32.xlu0 %v158_v37 }
 0x232   :  { %v155_v38 = vpop.permute.xlu0 %154  ;;  %v203_v39 = vpop.permute.xlu1 %202 }
 0x233   :  { %v161_v40 = vsel %vm44_vm1, %v155_v38, 0.0  ;;  %v208_v41 = vsel %vm44_vm1, %v203_v39, 0.0 }
 0x234   :  { %162 = vadd.xlane.f32.xlu1 %v161_v40  ;;  %209 = vadd.xlane.f32.xlu0 %v208_v41 }
 0x236   :  { %v205_v42 = vpop.permute.xlu0 %204 }
 0x237   :  { %v211_v43 = vsel %vm44_vm1, %v205_v42, 0.0 }
 0x238   :  { %212 = vadd.xlane.f32.xlu1 %v211_v43 }
 0x26c   :  { %v137_v44 = vpop.xlane.xlu0 %136 }
 0x26d   :  { %v134_v45 = vpop.xlane.xlu1 %133  ;;  %v144_v48 = vrot.slane %v137_v44, 4 }
 0x26e   :  { %v138_v46 = vrot.slane %v134_v45, 4 }
 0x26f   :  { %v145_v52 = vadd.f32 %v144_v48, %v137_v44 }
 0x270   :  { %v182_v47 = vpop.xlane.xlu0 %181  ;;  %v139_v49 = vadd.f32 %v138_v46, %v134_v45 }
 0x271   :  { %v186_v50 = vrot.slane %v182_v47, 4  ;;  %v185_v51 = vpop.xlane.xlu1 %184  ;;  %v146_v58 = vrot.slane %v145_v52, 2 }
 0x272   :  { %v140_v53 = vrot.slane %v139_v49, 2  ;;  %v192_v55 = vrot.slane %v185_v51, 4 }
 0x273   :  { %v187_v54 = vadd.f32 %v186_v50, %v182_v47  ;;  %v147_v4 = vadd.f32 %v146_v58, %v145_v52  ;;  %v254_v58 = vsub.s32 0, %v429_v11 }
 0x274   :  { %v141_v59 = vadd.f32 %v140_v53, %v139_v49  ;;  %v193_v61 = vadd.f32 %v192_v55, %v185_v51 }
 0x275   :  { %v188_v60 = vrot.slane %v187_v54, 2  ;;  %v148_v17 = vrot.slane %v147_v4, 1 }
 0x276   :  { %v142_v5 = vrot.slane %v141_v59, 1  ;;  %v194_v7 = vrot.slane %v193_v61, 2 }
 0x277   :  { %v189_v6 = vadd.f32 %v188_v60, %v187_v54  ;;  %v149_v33 = vadd.f32 %v148_v17, %v147_v4 }
 0x278   :  { %v143_v18 = vadd.f32 %v142_v5, %v141_v59  ;;  %v195_v20 = vadd.f32 %v194_v7, %v193_v61  ;;  %v245_v61 = vld [vmem:[%s493_s4] sm:$0x1] }
 0x279   :  { %v190_v19 = vrot.slane %v189_v6, 1 }
 0x27a   :  { %v196_v35 = vrot.slane %v195_v20, 1 }
 0x27b   :  { %v191_v34 = vadd.f32 %v190_v19, %v189_v6 }
 0x27c   :  { %v197_v43 = vadd.f32 %v196_v35, %v195_v20 }
 0x2b9   :  { %v160_v56 = vpop.xlane.xlu0 %159 }
 0x2ba   :  { %v164_v57 = vrot.slane %v160_v56, 4 }
 0x2bc   :  { %v165_v62 = vadd.f32 %v164_v57, %v160_v56  ;;  %v242_v57 = vld [vmem:[%s492_s3] sm:$0x1] }
 0x2bd   :  { %v163_v63 = vpop.xlane.xlu1 %162  ;;  %v210_v0 = vpop.xlane.xlu0 %209 }
 0x2be   :  { %v166_v1 = vrot.slane %v165_v62, 2  ;;  %v170_v2 = vrot.slane %v163_v63, 4  ;;  %v214_v3 = vrot.slane %v210_v0, 4 }
 0x2c0   :  { %v167_v8 = vadd.f32 %v166_v1, %v165_v62  ;;  %v171_v9 = vadd.f32 %v170_v2, %v163_v63  ;;  %v215_v10 = vadd.f32 %v214_v3, %v210_v0 }
 0x2c1   :  { %v213_v12 = vpop.xlane.xlu1 %212 }
 0x2c2   :  { %v168_v13 = vrot.slane %v167_v8, 1  ;;  %v172_v14 = vrot.slane %v171_v9, 2  ;;  %v216_v15 = vrot.slane %v215_v10, 2  ;;  %v220_v16 = vrot.slane %v213_v12, 4 }
 0x2c4   :  { %v169_v21 = vadd.f32 %v168_v13, %v167_v8  ;;  %v173_v23 = vadd.f32 %v172_v14, %v171_v9  ;;  %v217_v24 = vadd.f32 %v216_v15, %v215_v10  ;;  %v221_v26 = vadd.f32 %v220_v16, %v213_v12 }
 0x2c6   :  { %v176_v27 = vadd.f32 %v169_v21, %v143_v18  ;;  %v174_v30 = vrot.slane %v173_v23, 1  ;;  %v218_v31 = vrot.slane %v217_v24, 1  ;;  %v222_v32 = vrot.slane %v221_v26, 2 }
 0x2c8   :  { %v228_v36 = vmul.f32 0.001953125, %v176_v27  ;;  %v175_v37 = vadd.f32 %v174_v30, %v173_v23  ;;  %v219_v38 = vadd.f32 %v218_v31, %v217_v24  ;;  %v223_v39 = vadd.f32 %v222_v32, %v221_v26 }
 0x2ca   :  { %v177_v40 = vadd.f32 %v175_v37, %v149_v33  ;;  %v226_v41 = vadd.f32 %v219_v38, %v191_v34  ;;  %v224_v42 = vrot.slane %v223_v39, 1  ;;  %v232_v44 = vmul.f32 %v228_v36, %v228_v36 }
 0x2cc   :  { %v229_v45 = vmul.f32 0.001953125, %v177_v40  ;;  %v230_v46 = vmul.f32 0.001953125, %v226_v41  ;;  %v225_v47 = vadd.f32 %v224_v42, %v223_v39 }
 0x2ce   :  { %v234_v48 = vsub.f32 %v230_v46, %v232_v44  ;;  %v227_v49 = vadd.f32 %v225_v47, %v197_v43  ;;  %v233_v50 = vmul.f32 %v229_v45, %v229_v45 }
 0x2d0   :  { %v236_v51 = vmax.f32 %v234_v48, 0.0  ;;  %v231_v52 = vmul.f32 0.001953125, %v227_v49 }
 0x2d2   :  { %v238_v53 = vadd.f32 1e-05, %v236_v51  ;;  %v235_v54 = vsub.f32 %v231_v52, %v233_v50 }
 0x2d4   :  { %368 = vrsqrt.f32 %v238_v53  ;;  %v237_v55 = vmax.f32 %v235_v54, 0.0 }
 0x2d6   :  { %v239_v56 = vadd.f32 1e-05, %v237_v55 }
 0x2d8   :  { %370 = vrsqrt.f32 %v239_v56 }
 0x2e1   :  { %v369_v59 = vpop.eup %368 }
 0x2e2   :  { %v243_v60 = vmul.f32 %v369_v59, %v242_v57 }
 0x2e4   :  { %v255_v62 = vrot.slane %v243_v60, %v254_v58  ;;  %v246_v63 = vmul.f32 %v243_v60, %v228_v36 }
 0x2e5   :  { %v371_v0 = vpop.eup %370 }
 0x2e6   :  { %296 = vrot.lane.b32.xlu0 %v255_v62, %s383_s1  ;;  %v244_v1 = vmul.f32 %v371_v0, %v242_v57  ;;  %v248_v2 = vsub.f32 %v245_v61, %v246_v63  ;;  %v262_v3 = vmul.f32 %v255_v62, %v444_v28 }
 0x2e8   :  { %v259_v4 = vrot.slane %v244_v1, %v254_v58  ;;  %v247_v5 = vmul.f32 %v244_v1, %v229_v45  ;;  %v269_v6 = vrot.slane %v248_v2, %v254_v58 }
 0x2ea   :  { %298 = vrot.lane.b32.xlu1 %v259_v4, %s383_s1  ;;  %v249_v11 = vsub.f32 %v245_v61, %v247_v5  ;;  %v276_v7 = vadd.f32 %v269_v6, %v262_v3  ;;  %v263_v8 = vmul.f32 %v259_v4, %v446_v29 }
 0x2ec   :  { %v273_v9 = vrot.slane %v249_v11, %v254_v58  ;;  %v278_v10 = vmul.f32 %v276_v7, %v276_v7 }
 0x2ee   :  { %v277_v12 = vadd.f32 %v273_v9, %v263_v8  ;;  %306 = vrot.lane.b32.xlu0 %v273_v9, %s383_s1  ;;  %304 = vrot.lane.b32.xlu1 %v269_v6, %s383_s1  ;;  %v280_v13 = vmul.f32 %v278_v10, %v276_v7 }
 0x2f0   :  { %v279_v14 = vmul.f32 %v277_v12, %v277_v12  ;;  %v282_v15 = vmul.f32 0.044715, %v280_v13 }
 0x2f2   :  { %v281_v28 = vmul.f32 %v279_v14, %v277_v12  ;;  %v284_v16 = vadd.f32 %v282_v15, %v276_v7 }
 0x2f4   :  { %v283_v17 = vmul.f32 0.044715, %v281_v28  ;;  %v286_v18 = vmul.f32 0.7978846, %v284_v16 }
 0x2f6   :  { %v285_v19 = vadd.f32 %v283_v17, %v277_v12  ;;  %372 = vtanh.f32 %v286_v18 }
 0x2f8   :  { %v287_v20 = vmul.f32 0.7978846, %v285_v19 }
 0x2fa   :  { %374 = vtanh.f32 %v287_v20 }
 0x303   :  { %v373_v21 = vpop.eup %372 }
 0x304   :  { %v290_v29 = vadd.f32 1.0, %v373_v21 }
 0x306   :  { %v292_v23 = vmul.f32 0.5, %v290_v29 }
 0x307   :  { %v375_v24 = vpop.eup %374 }
 0x308   :  { %v291_v26 = vadd.f32 1.0, %v375_v24  ;;  %v294_v27 = vmul.f32 %v292_v23, %v276_v7 }
 0x30a   :  { %v293_v30 = vmul.f32 0.5, %v291_v26  ;;  %v330_v31 = vpack.c.bf16 %v294_v27, %v294_v27 }
 0x30c   :  { %v295_v32 = vmul.f32 %v293_v30, %v277_v12  ;;  %333 = vst.msk [vmem:[%s494_s5] sm:$0xf] %vm332_vm3, %v330_v31 }
 0x30e   :  { %v331_v33 = vpack.c.bf16 %v295_v32, %v295_v32 }
 0x310   :  { %334 = vst.msk [vmem:[%s494_s5 + $0x4] sm:$0xf] %vm332_vm3, %v331_v33 }
 0x358   :  { %v297_v34 = vpop.permute.xlu0 %296 }
 0x359   :  { %v302_v36 = vmul.f32 %v297_v34, %v434_v22 }
 0x35c   :  { %v299_v35 = vpop.permute.xlu1 %298 }
 0x35d   :  { %v303_v37 = vmul.f32 %v299_v35, %v437_v25 }
 0x360   :  { %v307_v38 = vpop.permute.xlu0 %306  ;;  %v305_v39 = vpop.permute.xlu1 %304 }
 0x361   :  { %v311_v40 = vadd.f32 %v307_v38, %v303_v37  ;;  %v310_v41 = vadd.f32 %v305_v39, %v302_v36 }
 0x363   :  { %v313_v42 = vmul.f32 %v311_v40, %v311_v40  ;;  %v312_v43 = vmul.f32 %v310_v41, %v310_v41 }
 0x365   :  { %v315_v44 = vmul.f32 %v313_v42, %v311_v40  ;;  %v314_v45 = vmul.f32 %v312_v43, %v310_v41 }
 0x367   :  { %v317_v46 = vmul.f32 0.044715, %v315_v44  ;;  %v316_v47 = vmul.f32 0.044715, %v314_v45 }
 0x369   :  { %v319_v48 = vadd.f32 %v317_v46, %v311_v40  ;;  %v318_v49 = vadd.f32 %v316_v47, %v310_v41 }
 0x36b   :  { %v321_v50 = vmul.f32 0.7978846, %v319_v48  ;;  %v320_v51 = vmul.f32 0.7978846, %v318_v49 }
 0x36d   :  { %376 = vtanh.f32 %v321_v50 }
 0x36e   :  { %378 = vtanh.f32 %v320_v51 }
 0x37a   :  { %v377_v52 = vpop.eup %376 }
 0x37b   :  { %v379_v22 = vpop.eup %378  ;;  %v325_v53 = vadd.f32 1.0, %v377_v52 }
 0x37c   :  { %v324_v25 = vadd.f32 1.0, %v379_v22 }
 0x37d   :  { %v327_v54 = vmul.f32 0.5, %v325_v53 }
 0x37e   :  { %v326_v55 = vmul.f32 0.5, %v324_v25 }
 0x37f   :  { %v329_v56 = vmul.f32 %v327_v54, %v311_v40 }
 0x380   :  { %v328_v57 = vmul.f32 %v326_v55, %v310_v41 }
 0x381   :  { %v336_v58 = vpack.c.bf16 %v329_v56, %v329_v56 }
 0x382   :  { %v335_v59 = vpack.c.bf16 %v328_v57, %v328_v57 }
 0x383   :  { %339 = vst.msk [vmem:[%s494_s5 + $0x4] sm:$0xf] %vm337_vm4, %v336_v58 }
 0x384   :  { %338 = vst.msk [vmem:[%s494_s5] sm:$0xf] %vm337_vm4, %v335_v59 }

</bundles_post_ra>
